<compile_context>
chip_gen: v7x
topology: tpu7x:2x2x1
jax: 0.10.0
libtpu: 0.0.40
codegen_flags: <defaults>
</compile_context>

<pallas_src>
import functools

import jax
import jax.numpy as jnp
from jax.experimental import pallas as pl
from jax.experimental.pallas import tpu as pltpu

_LANES = 128          # lane width of the flattened slab
_MAX_ROW_TILE = 4096  # (4096, 128) f32 = 2 MiB per input tile


def _sublane_multiple(dtype) -> int:
    """Minimum second-to-last tile dim for a dtype: 8 (f32), 16 (bf16), 32 (int8/fp8)."""
    return max(8, 32 // jnp.dtype(dtype).itemsize)


def _loss_kernel(pred_ref, tgt_ref, out_ref, acc_ref, *,
                 m_rows, row_tile, blocks_per_core, needs_mask):
    """Stream one (row_tile, 128) tile per step into a (3, 8, 128) f32 accumulator.

    acc_ref rows: [0] squared error, [1] absolute error, [2] BCE term.
    Each core (leading "parallel" grid axis) owns its own accumulator and
    writes its own (3, 8, 128) partial-sum slab; the wrapper sums the slabs.
    """
    c = pl.program_id(0)       # outer split across cores (parallel)
    i = pl.program_id(1)       # row-block within this core's range (arbitrary)

    @pl.when(i == 0)
    def _init():
        acc_ref[...] = jnp.zeros_like(acc_ref)

    def accumulate(p, t):
        d = p - t
        acc_ref[0] += jnp.sum((d * d).reshape(-1, 8, _LANES), axis=0)
        acc_ref[1] += jnp.sum(jnp.abs(d).reshape(-1, 8, _LANES), axis=0)
        # BCELoss term: -(t*log(p) + (1-t)*log(1-p)); torch clamps each log at
        # -100.  Factored as t*(log_p - log_1mp) + log_1mp with the negation
        # folded into a subtract-accumulate (fewer VALU ops per element).
        # TODO(synk): if profiles show EUP binding on v6e/v7x with bf16 inputs,
        # compute the two logs in bf16 there (keep f32 logs on v5e).
        log_p = jnp.maximum(jnp.log(p), -100.0)
        log_1mp = jnp.maximum(jnp.log(1.0 - p), -100.0)
        acc_ref[2] -= jnp.sum(
            (t * (log_p - log_1mp) + log_1mp).reshape(-1, 8, _LANES), axis=0)

    if needs_mask:
        # A ragged tail block (rows % row_tile != 0) and/or a "ghost" block
        # (odd block count split across two cores) exists.  Mask invalid rows
        # to (pred=1, target=1) BEFORE the logs: that pair contributes exactly
        # zero to all three sums, and where() never propagates DMA garbage.
        g = c * blocks_per_core + i           # global, un-clamped block index
        valid_rows = m_rows - g * row_tile    # <=0 ghost, <row_tile tail

        @pl.when(valid_rows >= row_tile)
        def _full():
            accumulate(pred_ref[...].astype(jnp.float32),
                       tgt_ref[...].astype(jnp.float32))

        @pl.when(valid_rows < row_tile)
        def _partial():
            row_ids = jax.lax.broadcasted_iota(jnp.int32, (row_tile, _LANES), 0)
            mask = row_ids < valid_rows
            p = jnp.where(mask, pred_ref[...].astype(jnp.float32), 1.0)
            t = jnp.where(mask, tgt_ref[...].astype(jnp.float32), 1.0)
            accumulate(p, t)
    else:
        accumulate(pred_ref[...].astype(jnp.float32),
                   tgt_ref[...].astype(jnp.float32))

    @pl.when(i == pl.num_programs(1) - 1)
    def _finalize():
        out_ref[0] = acc_ref[...]


@jax.jit
def loss_forward(output, target):
    """Returns dict of mean-reduced MSE, L1 and BCE losses (float32 scalars)."""
    assert output.shape == target.shape
    n = output.size

    # Flatten to a lane-dense [rows, 128] slab in the native dtype (bf16 inputs
    # stream at half the HBM bytes).  Only a <128-element lane remainder is
    # ever padded; (pred=1, target=1) padding contributes zero to every sum.
    # TODO(synk): the reshape itself may relayout in HBM for lane-unaligned
    # shapes; CompilerParams(allow_input_fusion=...) could fold it into the
    # pallas_call input fetch once validated on the target toolchain.
    flat_p = output.reshape(-1)
    flat_t = target.reshape(-1)
    rem = n % _LANES
    if rem:
        pad = _LANES - rem
        flat_p = jnp.concatenate([flat_p, jnp.ones((pad,), flat_p.dtype)])
        flat_t = jnp.concatenate([flat_t, jnp.ones((pad,), flat_t.dtype)])

    m_rows = flat_p.size // _LANES
    sub = _sublane_multiple(output.dtype)
    row_tile = min(_MAX_ROW_TILE, -(-m_rows // sub) * sub)
    num_blocks = -(-m_rows // row_tile)
    blocks_per_core = -(-num_blocks // 2)            # leading axis of size 2
    needs_mask = (m_rows % row_tile != 0) or (2 * blocks_per_core != num_blocks)

    pred2d = flat_p.reshape(m_rows, _LANES)
    tgt2d = flat_t.reshape(m_rows, _LANES)

    def in_map(c, i):
        # Clamp the possible ghost block (odd block count) to a valid index;
        # the kernel masks its contribution to exactly zero.
        return (jnp.minimum(c * blocks_per_core + i, num_blocks - 1), 0)

    kernel = functools.partial(
        _loss_kernel, m_rows=m_rows, row_tile=row_tile,
        blocks_per_core=blocks_per_core, needs_mask=needs_mask)

    partials = pl.pallas_call(
        kernel,
        out_shape=jax.ShapeDtypeStruct((2, 3, 8, _LANES), jnp.float32),
        grid_spec=pltpu.PrefetchScalarGridSpec(
            num_scalar_prefetch=0,
            grid=(2, blocks_per_core),
            in_specs=[
                pl.BlockSpec((row_tile, _LANES), in_map),
                pl.BlockSpec((row_tile, _LANES), in_map),
            ],
            out_specs=pl.BlockSpec((1, 3, 8, _LANES), lambda c, i: (c, 0, 0, 0)),
            scratch_shapes=[pltpu.VMEM((3, 8, _LANES), jnp.float32)],
        ),
        # Outer axis: independent per-core partial sums -> "parallel" (uses
        # both TensorCores on v7x, harmless on single-TC v5e/v6e).  Inner axis
        # carries the accumulator -> "arbitrary".
        # TODO(synk): sweep pipeline_mode=pl.Buffered(3) on the input specs if
        # traces show exposed DMA gaps at step boundaries.
        compiler_params=pltpu.CompilerParams(
            dimension_semantics=("parallel", "arbitrary")),
    )(pred2d, tgt2d)

    sums = jnp.sum(partials, axis=(0, 2, 3))
    inv_n = 1.0 / float(n)
    return {
        "mse": sums[0] * inv_n,
        "l1": sums[1] * inv_n,
        "bce": sums[2] * inv_n,
    }


if __name__ == "__main__":
    key = jax.random.PRNGKey(0)
    k1, k2 = jax.random.split(key)

    # NCHW inputs, small shapes: [B=2, C=4, H=16, W=16]  (2*4*16*16 = 2048 elems)
    logits = jax.random.normal(k1, (2, 4, 16, 16), dtype=jnp.float32)
    output = jax.nn.sigmoid(logits)                       # predictions in (0, 1) for BCE
    target = jax.random.uniform(k2, (2, 4, 16, 16), dtype=jnp.float32)

    losses = loss_forward(output, target)
    losses = jax.tree_util.tree_map(jax.block_until_ready, losses)

    # Reference check against plain JAX (same math as torch mean-reduced losses).
    d = output - target
    ref_mse = jnp.mean(d * d)
    ref_l1 = jnp.mean(jnp.abs(d))
    ref_bce = jnp.mean(-(target * jnp.maximum(jnp.log(output), -100.0)
                         + (1.0 - target) * jnp.maximum(jnp.log(1.0 - output), -100.0)))
    assert jnp.allclose(losses["mse"], ref_mse, rtol=1e-5, atol=1e-5)
    assert jnp.allclose(losses["l1"], ref_l1, rtol=1e-5, atol=1e-5)
    assert jnp.allclose(losses["bce"], ref_bce, rtol=1e-5, atol=1e-5)

    print("KERNEL_OK")
</pallas_src>

<mosaic_0001>
module attributes {stable_mosaic.version = 11 : i64} {
  func.func @_loss_kernel(%arg0: i32, %arg1: i32, %arg2: memref<16x128xf32, #tpu.memory_space<vmem>>, %arg3: memref<16x128xf32, #tpu.memory_space<vmem>>, %arg4: memref<1x3x8x128xf32, #tpu.memory_space<vmem>>, %arg5: memref<3x8x128xf32, #tpu.memory_space<vmem>>) attributes {dimension_semantics = [#tpu.dimension_semantics<parallel>, #tpu.dimension_semantics<arbitrary>], iteration_bounds = array<i64: 2, 1>, scalar_prefetch = 0 : i64, scratch_operands = 1 : i64, tpu.core_type = #tpu.core_type<tc>, window_params = [{transform_indices = @transform_0, window_bounds = array<i64: 16, 128>}, {transform_indices = @transform_1, window_bounds = array<i64: 16, 128>}, {transform_indices = @transform_2, window_bounds = array<i64: 1, 3, 8, 128>}]} {
    %c0_i32 = arith.constant 0 : i32
    %0 = arith.cmpi eq, %arg1, %c0_i32 : i32
    %1 = arith.extui %0 : i1 to i32
    %c0_i32_0 = arith.constant 0 : i32
    %2 = arith.cmpi ne, %1, %c0_i32_0 : i32
    scf.if %2 {
      %cst = arith.constant 0.000000e+00 : f32
      %16 = vector.broadcast %cst : f32 to vector<3x8x128xf32>
      %c0 = arith.constant 0 : index
      %c0_8 = arith.constant 0 : index
      %c0_9 = arith.constant 0 : index
      %17 = vector.load %arg5[%c0, %c0_8, %c0_9] : memref<3x8x128xf32, #tpu.memory_space<vmem>>, vector<3x8x128xf32>
      tpu.vector_store %arg5[%c0, %c0_8, %c0_9], %16 {strides = array<i32>} : memref<3x8x128xf32, #tpu.memory_space<vmem>>, vector<3x8x128xf32>,
    } else {
    }
    %c1_i32 = arith.constant 1 : i32
    %3 = arith.muli %arg0, %c1_i32 : i32
    %4 = arith.addi %3, %arg1 : i32
    %c16_i32 = arith.constant 16 : i32
    %5 = arith.muli %4, %c16_i32 : i32
    %c16_i32_1 = arith.constant 16 : i32
    %6 = arith.subi %c16_i32_1, %5 : i32
    %c16_i32_2 = arith.constant 16 : i32
    %7 = arith.cmpi sge, %6, %c16_i32_2 : i32
    %8 = arith.extui %7 : i1 to i32
    %c0_i32_3 = arith.constant 0 : i32
    %9 = arith.cmpi ne, %8, %c0_i32_3 : i32
    scf.if %9 {
      %c0 = arith.constant 0 : index
      %c0_8 = arith.constant 0 : index
      %16 = vector.load %arg2[%c0, %c0_8] : memref<16x128xf32, #tpu.memory_space<vmem>>, vector<16x128xf32>
      %c0_9 = arith.constant 0 : index
      %c0_10 = arith.constant 0 : index
      %17 = vector.load %arg3[%c0_9, %c0_10] : memref<16x128xf32, #tpu.memory_space<vmem>>, vector<16x128xf32>
      %18 = arith.subf %16, %17 : vector<16x128xf32>
      %c0_11 = arith.constant 0 : index
      %c0_12 = arith.constant 0 : index
      %c0_13 = arith.constant 0 : index
      %19 = vector.load %arg5[%c0_11, %c0_12, %c0_13] : memref<3x8x128xf32, #tpu.memory_space<vmem>>, vector<1x8x128xf32>
      %20 = vector.shape_cast %19 : vector<1x8x128xf32> to vector<8x128xf32>
      %21 = arith.mulf %18, %18 : vector<16x128xf32>
      %22 = vector.shape_cast %21 : vector<16x128xf32> to vector<2x8x128xf32>
      %cst = arith.constant dense<0.000000e+00> : vector<8x128xf32>
      %23 = vector.multi_reduction <add>, %22, %cst [0] : vector<2x8x128xf32> to vector<8x128xf32>
      %24 = arith.addf %20, %23 : vector<8x128xf32>
      %c0_14 = arith.constant 0 : index
      %c0_15 = arith.constant 0 : index
      %c0_16 = arith.constant 0 : index
      %25 = vector.load %arg5[%c0_14, %c0_15, %c0_16] : memref<3x8x128xf32, #tpu.memory_space<vmem>>, vector<1x8x128xf32>
      %26 = vector.shape_cast %25 : vector<1x8x128xf32> to vector<8x128xf32>
      %27 = vector.shape_cast %24 : vector<8x128xf32> to vector<1x8x128xf32>
      tpu.vector_store %arg5[%c0_14, %c0_15, %c0_16], %27 {strides = array<i32>} : memref<3x8x128xf32, #tpu.memory_space<vmem>>, vector<1x8x128xf32>,
      %c1 = arith.constant 1 : index
      %c0_17 = arith.constant 0 : index
      %c0_18 = arith.constant 0 : index
      %28 = vector.load %arg5[%c1, %c0_17, %c0_18] : memref<3x8x128xf32, #tpu.memory_space<vmem>>, vector<1x8x128xf32>
      %29 = vector.shape_cast %28 : vector<1x8x128xf32> to vector<8x128xf32>
      %30 = math.absf %18 : vector<16x128xf32>
      %31 = vector.shape_cast %30 : vector<16x128xf32> to vector<2x8x128xf32>
      %cst_19 = arith.constant dense<0.000000e+00> : vector<8x128xf32>
      %32 = vector.multi_reduction <add>, %31, %cst_19 [0] : vector<2x8x128xf32> to vector<8x128xf32>
      %33 = arith.addf %29, %32 : vector<8x128xf32>
      %c1_20 = arith.constant 1 : index
      %c0_21 = arith.constant 0 : index
      %c0_22 = arith.constant 0 : index
      %34 = vector.load %arg5[%c1_20, %c0_21, %c0_22] : memref<3x8x128xf32, #tpu.memory_space<vmem>>, vector<1x8x128xf32>
      %35 = vector.shape_cast %34 : vector<1x8x128xf32> to vector<8x128xf32>
      %36 = vector.shape_cast %33 : vector<8x128xf32> to vector<1x8x128xf32>
      tpu.vector_store %arg5[%c1_20, %c0_21, %c0_22], %36 {strides = array<i32>} : memref<3x8x128xf32, #tpu.memory_space<vmem>>, vector<1x8x128xf32>,
      %37 = math.log %16 : vector<16x128xf32>
      %cst_23 = arith.constant -1.000000e+02 : f32
      %38 = vector.broadcast %cst_23 : f32 to vector<16x128xf32>
      %39 = arith.maximumf %37, %38 : vector<16x128xf32>
      %cst_24 = arith.constant 1.000000e+00 : f32
      %40 = vector.broadcast %cst_24 : f32 to vector<16x128xf32>
      %41 = arith.subf %40, %16 : vector<16x128xf32>
      %42 = math.log %41 : vector<16x128xf32>
      %cst_25 = arith.constant -1.000000e+02 : f32
      %43 = vector.broadcast %cst_25 : f32 to vector<16x128xf32>
      %44 = arith.maximumf %42, %43 : vector<16x128xf32>
      %c2 = arith.constant 2 : index
      %c0_26 = arith.constant 0 : index
      %c0_27 = arith.constant 0 : index
      %45 = vector.load %arg5[%c2, %c0_26, %c0_27] : memref<3x8x128xf32, #tpu.memory_space<vmem>>, vector<1x8x128xf32>
      %46 = vector.shape_cast %45 : vector<1x8x128xf32> to vector<8x128xf32>
      %47 = arith.subf %39, %44 : vector<16x128xf32>
      %48 = arith.mulf %17, %47 : vector<16x128xf32>
      %49 = arith.addf %48, %44 : vector<16x128xf32>
      %50 = vector.shape_cast %49 : vector<16x128xf32> to vector<2x8x128xf32>
      %cst_28 = arith.constant dense<0.000000e+00> : vector<8x128xf32>
      %51 = vector.multi_reduction <add>, %50, %cst_28 [0] : vector<2x8x128xf32> to vector<8x128xf32>
      %52 = arith.subf %46, %51 : vector<8x128xf32>
      %c2_29 = arith.constant 2 : index
      %c0_30 = arith.constant 0 : index
      %c0_31 = arith.constant 0 : index
      %53 = vector.load %arg5[%c2_29, %c0_30, %c0_31] : memref<3x8x128xf32, #tpu.memory_space<vmem>>, vector<1x8x128xf32>
      %54 = vector.shape_cast %53 : vector<1x8x128xf32> to vector<8x128xf32>
      %55 = vector.shape_cast %52 : vector<8x128xf32> to vector<1x8x128xf32>
      tpu.vector_store %arg5[%c2_29, %c0_30, %c0_31], %55 {strides = array<i32>} : memref<3x8x128xf32, #tpu.memory_space<vmem>>, vector<1x8x128xf32>,
    } else {
    }
    %c16_i32_4 = arith.constant 16 : i32
    %10 = arith.cmpi slt, %6, %c16_i32_4 : i32
    %11 = arith.extui %10 : i1 to i32
    %c0_i32_5 = arith.constant 0 : i32
    %12 = arith.cmpi ne, %11, %c0_i32_5 : i32
    scf.if %12 {
      %16 = tpu.iota {dimensions = array<i32: 0>} : vector<16x128xi32>
      %17 = vector.broadcast %6 : i32 to vector<16x128xi32>
      %18 = arith.cmpi slt, %16, %17 : vector<16x128xi32>
      %c0 = arith.constant 0 : index
      %c0_8 = arith.constant 0 : index
      %19 = vector.load %arg2[%c0, %c0_8] : memref<16x128xf32, #tpu.memory_space<vmem>>, vector<16x128xf32>
      %cst = arith.constant 1.000000e+00 : f32
      %20 = vector.broadcast %cst : f32 to vector<16x128xf32>
      %21 = arith.select %18, %19, %20 : vector<16x128xi1>, vector<16x128xf32>
      %c0_9 = arith.constant 0 : index
      %c0_10 = arith.constant 0 : index
      %22 = vector.load %arg3[%c0_9, %c0_10] : memref<16x128xf32, #tpu.memory_space<vmem>>, vector<16x128xf32>
      %cst_11 = arith.constant 1.000000e+00 : f32
      %23 = vector.broadcast %cst_11 : f32 to vector<16x128xf32>
      %24 = arith.select %18, %22, %23 : vector<16x128xi1>, vector<16x128xf32>
      %25 = arith.subf %21, %24 : vector<16x128xf32>
      %c0_12 = arith.constant 0 : index
      %c0_13 = arith.constant 0 : index
      %c0_14 = arith.constant 0 : index
      %26 = vector.load %arg5[%c0_12, %c0_13, %c0_14] : memref<3x8x128xf32, #tpu.memory_space<vmem>>, vector<1x8x128xf32>
      %27 = vector.shape_cast %26 : vector<1x8x128xf32> to vector<8x128xf32>
      %28 = arith.mulf %25, %25 : vector<16x128xf32>
      %29 = vector.shape_cast %28 : vector<16x128xf32> to vector<2x8x128xf32>
      %cst_15 = arith.constant dense<0.000000e+00> : vector<8x128xf32>
      %30 = vector.multi_reduction <add>, %29, %cst_15 [0] : vector<2x8x128xf32> to vector<8x128xf32>
      %31 = arith.addf %27, %30 : vector<8x128xf32>
      %c0_16 = arith.constant 0 : index
      %c0_17 = arith.constant 0 : index
      %c0_18 = arith.constant 0 : index
      %32 = vector.load %arg5[%c0_16, %c0_17, %c0_18] : memref<3x8x128xf32, #tpu.memory_space<vmem>>, vector<1x8x128xf32>
      %33 = vector.shape_cast %32 : vector<1x8x128xf32> to vector<8x128xf32>
      %34 = vector.shape_cast %31 : vector<8x128xf32> to vector<1x8x128xf32>
      tpu.vector_store %arg5[%c0_16, %c0_17, %c0_18], %34 {strides = array<i32>} : memref<3x8x128xf32, #tpu.memory_space<vmem>>, vector<1x8x128xf32>,
      %c1 = arith.constant 1 : index
      %c0_19 = arith.constant 0 : index
      %c0_20 = arith.constant 0 : index
      %35 = vector.load %arg5[%c1, %c0_19, %c0_20] : memref<3x8x128xf32, #tpu.memory_space<vmem>>, vector<1x8x128xf32>
      %36 = vector.shape_cast %35 : vector<1x8x128xf32> to vector<8x128xf32>
      %37 = math.absf %25 : vector<16x128xf32>
      %38 = vector.shape_cast %37 : vector<16x128xf32> to vector<2x8x128xf32>
      %cst_21 = arith.constant dense<0.000000e+00> : vector<8x128xf32>
      %39 = vector.multi_reduction <add>, %38, %cst_21 [0] : vector<2x8x128xf32> to vector<8x128xf32>
      %40 = arith.addf %36, %39 : vector<8x128xf32>
      %c1_22 = arith.constant 1 : index
      %c0_23 = arith.constant 0 : index
      %c0_24 = arith.constant 0 : index
      %41 = vector.load %arg5[%c1_22, %c0_23, %c0_24] : memref<3x8x128xf32, #tpu.memory_space<vmem>>, vector<1x8x128xf32>
      %42 = vector.shape_cast %41 : vector<1x8x128xf32> to vector<8x128xf32>
      %43 = vector.shape_cast %40 : vector<8x128xf32> to vector<1x8x128xf32>
      tpu.vector_store %arg5[%c1_22, %c0_23, %c0_24], %43 {strides = array<i32>} : memref<3x8x128xf32, #tpu.memory_space<vmem>>, vector<1x8x128xf32>,
      %44 = math.log %21 : vector<16x128xf32>
      %cst_25 = arith.constant -1.000000e+02 : f32
      %45 = vector.broadcast %cst_25 : f32 to vector<16x128xf32>
      %46 = arith.maximumf %44, %45 : vector<16x128xf32>
      %cst_26 = arith.constant 1.000000e+00 : f32
      %47 = vector.broadcast %cst_26 : f32 to vector<16x128xf32>
      %48 = arith.subf %47, %21 : vector<16x128xf32>
      %49 = math.log %48 : vector<16x128xf32>
      %cst_27 = arith.constant -1.000000e+02 : f32
      %50 = vector.broadcast %cst_27 : f32 to vector<16x128xf32>
      %51 = arith.maximumf %49, %50 : vector<16x128xf32>
      %c2 = arith.constant 2 : index
      %c0_28 = arith.constant 0 : index
      %c0_29 = arith.constant 0 : index
      %52 = vector.load %arg5[%c2, %c0_28, %c0_29] : memref<3x8x128xf32, #tpu.memory_space<vmem>>, vector<1x8x128xf32>
      %53 = vector.shape_cast %52 : vector<1x8x128xf32> to vector<8x128xf32>
      %54 = arith.subf %46, %51 : vector<16x128xf32>
      %55 = arith.mulf %24, %54 : vector<16x128xf32>
      %56 = arith.addf %55, %51 : vector<16x128xf32>
      %57 = vector.shape_cast %56 : vector<16x128xf32> to vector<2x8x128xf32>
      %cst_30 = arith.constant dense<0.000000e+00> : vector<8x128xf32>
      %58 = vector.multi_reduction <add>, %57, %cst_30 [0] : vector<2x8x128xf32> to vector<8x128xf32>
      %59 = arith.subf %53, %58 : vector<8x128xf32>
      %c2_31 = arith.constant 2 : index
      %c0_32 = arith.constant 0 : index
      %c0_33 = arith.constant 0 : index
      %60 = vector.load %arg5[%c2_31, %c0_32, %c0_33] : memref<3x8x128xf32, #tpu.memory_space<vmem>>, vector<1x8x128xf32>
      %61 = vector.shape_cast %60 : vector<1x8x128xf32> to vector<8x128xf32>
      %62 = vector.shape_cast %59 : vector<8x128xf32> to vector<1x8x128xf32>
      tpu.vector_store %arg5[%c2_31, %c0_32, %c0_33], %62 {strides = array<i32>} : memref<3x8x128xf32, #tpu.memory_space<vmem>>, vector<1x8x128xf32>,
    } else {
    }
    %c0_i32_6 = arith.constant 0 : i32
    %13 = arith.cmpi eq, %arg1, %c0_i32_6 : i32
    %14 = arith.extui %13 : i1 to i32
    %c0_i32_7 = arith.constant 0 : i32
    %15 = arith.cmpi ne, %14, %c0_i32_7 : i32
    scf.if %15 {
      %c0 = arith.constant 0 : index
      %c0_8 = arith.constant 0 : index
      %c0_9 = arith.constant 0 : index
      %16 = vector.load %arg5[%c0, %c0_8, %c0_9] : memref<3x8x128xf32, #tpu.memory_space<vmem>>, vector<3x8x128xf32>
      %c0_10 = arith.constant 0 : index
      %c0_11 = arith.constant 0 : index
      %c0_12 = arith.constant 0 : index
      %c0_13 = arith.constant 0 : index
      %17 = vector.load %arg4[%c0_10, %c0_11, %c0_12, %c0_13] : memref<1x3x8x128xf32, #tpu.memory_space<vmem>>, vector<1x3x8x128xf32>
      %18 = vector.shape_cast %17 : vector<1x3x8x128xf32> to vector<3x8x128xf32>
      %19 = vector.shape_cast %16 : vector<3x8x128xf32> to vector<1x3x8x128xf32>
      tpu.vector_store %arg4[%c0_10, %c0_11, %c0_12, %c0_13], %19 {strides = array<i32>} : memref<1x3x8x128xf32, #tpu.memory_space<vmem>>, vector<1x3x8x128xf32>,
    } else {
    }
    return
  }
  func.func @transform_0(%arg0: i32, %arg1: i32) -> (i32, i32) {
    %c1_i32 = arith.constant 1 : i32
    %0 = arith.muli %arg0, %c1_i32 : i32
    %1 = arith.addi %0, %arg1 : i32
    %c0_i32 = arith.constant 0 : i32
    %2 = arith.minsi %1, %c0_i32 : i32
    %c0_i32_0 = arith.constant 0 : i32
    %c0_i32_1 = arith.constant 0 : i32
    return %2, %c0_i32_0 : i32, i32
  }
  func.func @transform_1(%arg0: i32, %arg1: i32) -> (i32, i32) {
    %c1_i32 = arith.constant 1 : i32
    %0 = arith.muli %arg0, %c1_i32 : i32
    %1 = arith.addi %0, %arg1 : i32
    %c0_i32 = arith.constant 0 : i32
    %2 = arith.minsi %1, %c0_i32 : i32
    %c0_i32_0 = arith.constant 0 : i32
    %c0_i32_1 = arith.constant 0 : i32
    return %2, %c0_i32_0 : i32, i32
  }
  func.func @transform_2(%arg0: i32, %arg1: i32) -> (i32, i32, i32, i32) {
    %c0_i32 = arith.constant 0 : i32
    %c0_i32_0 = arith.constant 0 : i32
    %c0_i32_1 = arith.constant 0 : i32
    %c0_i32_2 = arith.constant 0 : i32
    return %arg0, %c0_i32, %c0_i32_0, %c0_i32_1 : i32, i32, i32, i32
  }
}

</mosaic_0001>

<bundles_post_ra>
// kernel: loss_forward.1
= control target key start
LH: loop header
LB: loop body
LE: loop exit
PB: predicated region body
PF: predicated region fallthrough
CT: control target
= control target key end

     0   :  { %s519_s9 = smov 0   ;;  %s521_s10 = smov 0   ;;  %s577_s0 = inlined_call_operand.vmem [shape: f32[16,128], index: 0, kind: input, shape index: {}]   ;;  %s578_s1 = inlined_call_operand.vmem [shape: f32[16,128], index: 1, kind: input, shape index: {}]   ;;  %s579_s2 = inlined_call_operand.vmem [shape: f32[2,3,8,128], index: 2, kind: output, shape index: {}]  }
   0x1   :  { %s523_s11 = smov 0  }
   0x2 LB: > { %s24_s12 = sadd.s32 1, %s497_s10  ;;  %p426_p0 = scmp.ge.s32.totalorder %s501_s11, 1  ;;  %s501_s11 = sphi %s523_s11, %s12_s11   ;;  %s497_s10 = sphi %s521_s10, %s581_s10   ;;  %s493_s9 = sphi %s519_s9, %s580_s9  }
   0x3   : > { %p26_p1 = scmp.ge.s32.totalorder %s24_s12, 2  ;;  %p160_p2 = scmp.lt.s32.totalorder %s501_s11, 3 }
   0x5   : > { %s583_s12 = smov (%p26_p1, %s24_s12), 0  ;;  %p161_p3 = pnand %p426_p0, %p160_p2 }
   0x6   : > { %p194_p4 = scmp.lt.s32.totalorder (!%p161_p3), %s493_s9, 0  ;;  %p217_p5 = scmp.lt.s32.totalorder (!%p161_p3), %s493_s9, 1  ;;  %v503_v0 = vmov (!%p161_p3), 0.0  }
   0x7   : > { %164 = sbr.rel (%p161_p3) target bundleno = 99 (0x63), region = 28  ;;  %226 = vst [vmem:[#allocation2] sm:$0xff] (!%p161_p3), %v503_v0  ;;  %227 = vst [vmem:[#allocation2 + $0x8] sm:$0xff] (!%p161_p3), %v503_v0  ;;  %s432_s13 = sshll.u32 (!%p161_p3), %s493_s9, 4 }
   0x8   : > { %228 = vst [vmem:[#allocation2 + $0x10] sm:$0xff] (!%p161_p3), %v503_v0  ;;  %s537_s16 = ssub.s32 (!%p161_p3), 16, %s432_s13 }
   0x9   : > { %p433_p7 = scmp.lt.s32.totalorder (!%p161_p3), %s537_s16, 16 }
   0xe   : > { %s195_s14 = scalar_select %p194_p4, %s493_s9, 0 }
   0xf   : > { %s585_s9 = smov (!%p217_p5, %s493_s9), 1  ;;  %235 = sbr.rel (%p433_p7) target bundleno = 53 (0x35), region = 36 }
  0x10   : > { %s427_s15 = sshll.u32 %s195_s14, 1  ;;  %s437_s17 = smul.u32 24, %s585_s9  ;;  %v242_v13 = vld [vmem:[#allocation2] sm:$0xff] (!%p433_p7)  ;;  %v249_v14 = vld [vmem:[#allocation2 + $0x8] sm:$0xff] (!%p433_p7)  ;;  %v270_v37 = vld [vmem:[#allocation2 + $0x10] sm:$0xff] (!%p433_p7) }
  0x11   : > { %p197_p6 = scmp.lt.s32.totalorder %s427_s15, 1 }
  0x12   : > { %s542_s20 = scalar_lea.vmem %s579_s2, %s437_s17 }
  0x13   : > { %s587_s15 = smov (!%p197_p6, %s427_s15), 1 }
  0x14   : > { %s428_s21 = sshll.u32 %s587_s15, 3 }
  0x15   : > { %s547_s24 = scalar_lea.vmem %s577_s0, %s428_s21  ;;  %s552_s27 = scalar_lea.vmem %s578_s1, %s428_s21 }
  0x16   : > { %v236_v1 = vld [vmem:[%s547_s24] sm:$0xff]  ;;  %v237_v2 = vld [vmem:[%s547_s24 + $0x8] sm:$0xff] }
  0x17   : > { %v238_v3 = vld [vmem:[%s552_s27] sm:$0xff]  ;;  %v239_v4 = vld [vmem:[%s552_s27 + $0x8] sm:$0xff]  ;;  %463 = vlog2.f32 %v236_v1  ;;  %v261_v6 = vsub.f32 1.0, %v236_v1  ;;  %v262_v7 = vsub.f32 1.0, %v237_v2 }
  0x18   : > { %v240_v5 = vsub.f32 %v236_v1, %v238_v3  ;;  %v241_v8 = vsub.f32 %v237_v2, %v239_v4  ;;  %465 = vlog2.f32 %v237_v2 }
  0x19   : > { %467 = vlog2.f32 %v261_v6 }
  0x1a   : > { %v243_v9 = vmul.f32 %v240_v5, %v240_v5  ;;  %v250_v10 = vand.u32 2147483647, %v240_v5  ;;  %v244_v11 = vmul.f32 %v241_v8, %v241_v8  ;;  %v251_v12 = vand.u32 2147483647, %v241_v8 }
  0x1b   : > { %469 = vlog2.f32 %v262_v7 }
  0x1c   : > { %v245_v15 = vadd.f32 %v244_v11, %v243_v9  ;;  %v252_v16 = vadd.f32 %v251_v12, %v250_v10 }
  0x1e   : > { %v246_v17 = vadd.f32 %v245_v15, %v242_v13  ;;  %v253_v18 = vadd.f32 %v252_v16, %v249_v14 }
  0x20   : > { %247 = vst [vmem:[#allocation2] sm:$0xff] %v246_v17  ;;  %254 = vst [vmem:[#allocation2 + $0x8] sm:$0xff] %v253_v18 }
  0x21   : > { %v464_v19 = vpop.eup %463 }
  0x22   : > { %v466_v20 = vpop.eup %465  ;;  %v256_v21 = vmul.f32 0.6931472, %v464_v19 }
  0x23   : > { %v468_v22 = vpop.eup %467  ;;  %v258_v23 = vmul.f32 0.6931472, %v466_v20 }
  0x24   : > { %v259_v25 = vmax.f32 %v256_v21, -100.0  ;;  %v264_v26 = vmul.f32 0.6931472, %v468_v22 }
  0x25   : > { %v470_v24 = vpop.eup %469  ;;  %v260_v27 = vmax.f32 %v258_v23, -100.0 }
  0x26   : > { %v266_v28 = vmul.f32 0.6931472, %v470_v24  ;;  %v267_v29 = vmax.f32 %v264_v26, -100.0 }
  0x28   : > { %v268_v30 = vmax.f32 %v266_v28, -100.0  ;;  %v271_v31 = vsub.f32 %v259_v25, %v267_v29 }
  0x2a   : > { %v272_v32 = vsub.f32 %v260_v27, %v268_v30  ;;  %v273_v33 = vmul.f32 %v271_v31, %v238_v3 }
  0x2c   : > { %v274_v34 = vmul.f32 %v272_v32, %v239_v4  ;;  %v275_v35 = vadd.f32 %v273_v33, %v267_v29 }
  0x2e   : > { %v276_v36 = vadd.f32 %v274_v34, %v268_v30 }
  0x30   : > { %v277_v38 = vadd.f32 %v276_v36, %v275_v35 }
  0x32   : > { %v278_v39 = vsub.f32 %v270_v37, %v277_v38 }
  0x34   : > { %279 = vst [vmem:[#allocation2 + $0x10] sm:$0xff] %v278_v39 }
  0x35 PF: > { %p434_p8 = scmp.ge.s32.totalorder %s537_s16, 16 }
  0x36   : > { %v284_v40 = vlaneseq (!%p434_p8)  ;;  %v287_v41 = vstv (!%p434_p8), %s537_s16  ;;  %v290_v43 = vld [vmem:[%s547_s24] sm:$0xff] (!%p434_p8)  ;;  %v291_v46 = vld [vmem:[%s547_s24 + $0x8] sm:$0xff] (!%p434_p8) }
  0x37   : > { %283 = sbr.rel (%p434_p8) target bundleno = 91 (0x5b), region = 40  ;;  %v294_v44 = vld [vmem:[%s552_s27] sm:$0xff] (!%p434_p8)  ;;  %v295_v47 = vld [vmem:[%s552_s27 + $0x8] sm:$0xff] (!%p434_p8) }
  0x38   : > { %v285_v42 = vshrl.u32 (!%p434_p8), %v284_v40, 7  ;;  %v300_v60 = vld [vmem:[#allocation2] sm:$0xff] (!%p434_p8)  ;;  %v307_v61 = vld [vmem:[#allocation2 + $0x8] sm:$0xff] (!%p434_p8) }
  0x3a   : > { %v286_v45 = vadd.s32 (!%p434_p8), 8, %v285_v42  ;;  %vm288_vm0 = vcmp.lt.s32.totalorder (!%p434_p8), %v285_v42, %v287_v41 }
  0x3b   : > { %v292_v48 = vsel (!%p434_p8), %vm288_vm0, %v290_v43, 1.0  ;;  %v296_v49 = vsel (!%p434_p8), %vm288_vm0, %v294_v44, 1.0  ;;  %v328_v20 = vld [vmem:[#allocation2 + $0x10] sm:$0xff] (!%p434_p8) }
  0x3c   : > { %vm289_vm1 = vcmp.lt.s32.totalorder (!%p434_p8), %v286_v45, %v287_v41  ;;  %v298_v50 = vsub.f32 (!%p434_p8), %v292_v48, %v296_v49  ;;  %471 = vlog2.f32 (!%p434_p8), %v292_v48  ;;  %v319_v51 = vsub.f32 (!%p434_p8), 1.0, %v292_v48 }
  0x3d   : > { %v293_v52 = vsel (!%p434_p8), %vm289_vm1, %v291_v46, 1.0  ;;  %v297_v53 = vsel (!%p434_p8), %vm289_vm1, %v295_v47, 1.0 }
  0x3e   : > { %v299_v54 = vsub.f32 %v293_v52, %v297_v53  ;;  %v301_v55 = vmul.f32 %v298_v50, %v298_v50  ;;  %473 = vlog2.f32 %v293_v52  ;;  %v308_v56 = vand.u32 2147483647, %v298_v50 }
  0x3f   : > { %v320_v57 = vsub.f32 1.0, %v293_v52  ;;  %475 = vlog2.f32 %v319_v51 }
  0x40   : > { %v302_v58 = vmul.f32 %v299_v54, %v299_v54  ;;  %v309_v59 = vand.u32 2147483647, %v299_v54 }
  0x41   : > { %477 = vlog2.f32 %v320_v57 }
  0x42   : > { %v303_v62 = vadd.f32 %v302_v58, %v301_v55  ;;  %v310_v63 = vadd.f32 %v309_v59, %v308_v56 }
  0x44   : > { %v304_v0 = vadd.f32 %v303_v62, %v300_v60  ;;  %v311_v1 = vadd.f32 %v310_v63, %v307_v61 }
  0x46   : > { %v472_v2 = vpop.eup %471  ;;  %305 = vst [vmem:[#allocation2] sm:$0xff] %v304_v0  ;;  %312 = vst [vmem:[#allocation2 + $0x8] sm:$0xff] %v311_v1 }
  0x47   : > { %v314_v3 = vmul.f32 0.6931472, %v472_v2 }
  0x48   : > { %v474_v4 = vpop.eup %473 }
  0x49   : > { %v476_v5 = vpop.eup %475  ;;  %v316_v6 = vmul.f32 0.6931472, %v474_v4  ;;  %v317_v7 = vmax.f32 %v314_v3, -100.0 }
  0x4a   : > { %v322_v8 = vmul.f32 0.6931472, %v476_v5 }
  0x4b   : > { %v478_v9 = vpop.eup %477  ;;  %v318_v10 = vmax.f32 %v316_v6, -100.0 }
  0x4c   : > { %v324_v11 = vmul.f32 0.6931472, %v478_v9  ;;  %v325_v12 = vmax.f32 %v322_v8, -100.0 }
  0x4e   : > { %v326_v13 = vmax.f32 %v324_v11, -100.0  ;;  %v329_v14 = vsub.f32 %v317_v7, %v325_v12 }
  0x50   : > { %v330_v15 = vsub.f32 %v318_v10, %v326_v13  ;;  %v331_v16 = vmul.f32 %v329_v14, %v296_v49 }
  0x52   : > { %v332_v17 = vmul.f32 %v330_v15, %v297_v53  ;;  %v333_v18 = vadd.f32 %v331_v16, %v325_v12 }
  0x54   : > { %v334_v19 = vadd.f32 %v332_v17, %v326_v13 }
  0x56   : > { %v335_v21 = vadd.f32 %v334_v19, %v333_v18 }
  0x58   : > { %v336_v22 = vsub.f32 %v328_v20, %v335_v21 }
  0x5a   : > { %337 = vst [vmem:[#allocation2 + $0x10] sm:$0xff] %v336_v22 }
  0x5b PF: > { %v341_v23 = vld [vmem:[#allocation2] sm:$0xff]  ;;  %v342_v24 = vld [vmem:[#allocation2 + $0x8] sm:$0xff] }
  0x5c   : > { %344 = vst [vmem:[%s542_s20] sm:$0xff] %v341_v23  ;;  %345 = vst [vmem:[%s542_s20 + $0x8] sm:$0xff] %v342_v24 }
  0x61   : > { %v343_v25 = vld [vmem:[#allocation2 + $0x10] sm:$0xff] }
  0x62   : > { %346 = vst [vmem:[%s542_s20 + $0x10] sm:$0xff] %v343_v25 }
  0x63 PF: > { %s12_s11 = sadd.s32 1, %s501_s11   ;;  %s580_s9 = smov %s497_s10 }
  0x64   : > { %p9_p9 = scmp.ge.s32.totalorder %s12_s11, 4   ;;  %s581_s10 = smov %s583_s12 }
  0x66   :  { %11 = sbr.rel (!%p9_p9) target bundleno = 2 (0x2), region = 81 }

</bundles_post_ra>
